<compile_context>
chip_gen: v6e
topology: v6e:2x2x1
jax: 0.10.0
libtpu: 0.0.40
codegen_flags: <defaults>
</compile_context>

<pallas_src>
import functools
import math

import jax
import jax.numpy as jnp
from jax import lax
from jax.experimental import pallas as pl
from jax.experimental.pallas import tpu as pltpu


# ---------------------------------------------------------------------------
# Hardware-aware defaults (v5e/v6e: 128 MiB VMEM, v7x: 64 MiB per TensorCore)
# ---------------------------------------------------------------------------
def _vmem_capacity_bytes():
    try:
        info = pltpu.get_tpu_info()
        cap = getattr(info, "vmem_capacity_bytes", None)
        if cap:
            return int(cap)
    except Exception:
        pass
    return 64 * 1024 * 1024  # conservative (v7x-sized) fallback


_VMEM_BYTES = _vmem_capacity_bytes()
_VMEM_LIMIT = int(min(_VMEM_BYTES * 3 // 4, 100 * 1024 * 1024))

if _VMEM_BYTES >= 128 * 1024 * 1024:            # v5e / v6e (96 MiB limit)
    _LIN_TM, _LIN_TN, _LIN_TK = 512, 1024, 1024
else:                                           # v7x (48 MiB limit per TC)
    _LIN_TM, _LIN_TN, _LIN_TK = 512, 512, 512

_ATT_TQ, _ATT_TKV = 256, 512                    # caps; final tiles are budgeted


def _pick_tile(dim, preferred):
    """Largest multiple-of-128 divisor of `dim` <= preferred, else dim itself."""
    if dim <= preferred:
        return dim
    t = (preferred // 128) * 128
    while t >= 128:
        if dim % t == 0:
            return t
        t -= 128
    return dim


def _tile_candidates(dim, cap):
    """Descending list of multiple-of-128 divisors of dim (<= cap), or [dim]."""
    cands = []
    t = 128
    while t <= min(dim, cap):
        if dim % t == 0:
            cands.append(t)
        t += 128
    if not cands:
        cands = [dim]
    return sorted(cands, reverse=True)


def _attention_tiles(S, d_k, dsize):
    """Pick (tq, tkv) from the chip's VMEM budget (per-head d_k layout)."""
    budget = max(_VMEM_LIMIT // 2, 4 * 1024 * 1024)
    tq_cands = _tile_candidates(S, _ATT_TQ)
    tkv_cands = _tile_candidates(S, _ATT_TKV)

    def vmem_use(tq, tkv):
        io = 2 * (2 * tq + 2 * tkv) * d_k * dsize      # double-buffered q/k/v/o
        scratch = tq * d_k * 4 + 8 * tq                # f32 acc + m + l
        temps = 3 * tq * tkv * 4                       # f32 s / p temporaries
        return io + scratch + temps

    for tq in tq_cands:
        for tkv in tkv_cands:
            if vmem_use(tq, tkv) <= budget:
                return tq, tkv
    return tq_cands[-1], tkv_cands[-1]


# ---------------------------------------------------------------------------
# Kernel 1: tiled linear layer  y = x @ W + b
#   x: (M, K) bf16, W: (K, N) bf16 (PyTorch weight transposed), b: (1, N) f32
# ---------------------------------------------------------------------------
def _linear_kernel(x_ref, w_ref, b_ref, o_ref, acc_ref):
    k = pl.program_id(2)

    @pl.when(k == 0)
    def _init():
        acc_ref[...] = jnp.zeros_like(acc_ref)

    # bf16 MXU operands, f32 accumulation.
    acc_ref[...] += jnp.dot(x_ref[...], w_ref[...],
                            preferred_element_type=jnp.float32)

    @pl.when(k == pl.num_programs(2) - 1)
    def _finalize():
        o_ref[...] = (acc_ref[...] + b_ref[...]).astype(o_ref.dtype)


def linear(x, w, b, *, out_dtype=None, tm=None, tn=None, tk=None):
    M, K = x.shape
    K2, N = w.shape
    assert K == K2 and b.shape[-1] == N
    out_dtype = x.dtype if out_dtype is None else out_dtype

    tm = _pick_tile(M, _LIN_TM) if tm is None else tm
    tn = _pick_tile(N, _LIN_TN) if tn is None else tn
    tk = _pick_tile(K, _LIN_TK) if tk is None else tk
    assert M % tm == 0 and N % tn == 0 and K % tk == 0, (M, N, K, tm, tn, tk)
    grid = (M // tm, N // tn, K // tk)

    # bf16 operands: full MXU rate and half the HBM/DMA/VMEM traffic.
    x16 = x.astype(jnp.bfloat16)
    w16 = w.astype(jnp.bfloat16)
    b32 = b.reshape(1, N).astype(jnp.float32)

    cost = pl.CostEstimate(
        flops=2 * M * N * K,
        transcendentals=0,
        bytes_accessed=int(2 * (M * K * (N // tn) + K * N * (M // tm))
                           + 4 * N + M * N * jnp.dtype(out_dtype).itemsize),
    )

    return pl.pallas_call(
        _linear_kernel,
        out_shape=jax.ShapeDtypeStruct((M, N), out_dtype),
        grid_spec=pltpu.PrefetchScalarGridSpec(
            num_scalar_prefetch=0,
            grid=grid,
            in_specs=[
                pl.BlockSpec((tm, tk), lambda i, j, k: (i, k)),
                pl.BlockSpec((tk, tn), lambda i, j, k: (k, j)),
                pl.BlockSpec((1, tn), lambda i, j, k: (0, j)),
            ],
            out_specs=pl.BlockSpec((tm, tn), lambda i, j, k: (i, j)),
            scratch_shapes=[pltpu.VMEM((tm, tn), jnp.float32)],
        ),
        compiler_params=pltpu.CompilerParams(
            dimension_semantics=("parallel", "parallel", "arbitrary"),
            vmem_limit_bytes=_VMEM_LIMIT,
        ),
        cost_estimate=cost,
    )(x16, w16, b32)


# ---------------------------------------------------------------------------
# Kernel 2: flash-style online-softmax attention for one (head, q-tile) block.
# Blocks are (1, tq, d_k) / (1, tkv, d_k); heads live on the grid, so there is
# no lane slicing or head loop inside the kernel.  1/sqrt(d_k) is pre-folded
# into the Q projection weights.
# ---------------------------------------------------------------------------
def _flash_kernel(q_ref, k_ref, v_ref, o_ref, m_sc, l_sc, acc_sc, *, kv_axis):
    kv = pl.program_id(kv_axis)

    @pl.when(kv == 0)
    def _init():
        m_sc[...] = jnp.full_like(m_sc, -jnp.inf)
        l_sc[...] = jnp.zeros_like(l_sc)
        acc_sc[...] = jnp.zeros_like(acc_sc)

    q = q_ref[0].astype(jnp.bfloat16)      # (tq,  d_k)
    k = k_ref[0].astype(jnp.bfloat16)      # (tkv, d_k)
    v = v_ref[0].astype(jnp.bfloat16)      # (tkv, d_k)

    # scores = q @ k^T, contracting the last dims (no materialized transpose);
    # bf16 MXU operands, f32 accumulation.
    s = lax.dot_general(q, k, (((1,), (1,)), ((), ())),
                        preferred_element_type=jnp.float32)      # (tq, tkv) f32

    m_prev = m_sc[...]                                            # (tq, 1) f32
    m_new = jnp.maximum(m_prev, jnp.max(s, axis=-1, keepdims=True))
    alpha = jnp.exp(m_prev - m_new)                               # f32 EUP
    p = jnp.exp(s - m_new)                                        # (tq, tkv) f32
    l_sc[...] = alpha * l_sc[...] + jnp.sum(p, axis=-1, keepdims=True)
    acc_sc[...] = alpha * acc_sc[...] + jnp.dot(
        p.astype(jnp.bfloat16), v, preferred_element_type=jnp.float32)
    m_sc[...] = m_new

    @pl.when(kv == pl.num_programs(kv_axis) - 1)
    def _finalize():
        inv_l = pl.reciprocal(l_sc[...], approx=True)   # EUP vrcp (free slot)
        o_ref[0] = (acc_sc[...] * inv_l).astype(o_ref.dtype)


def mha_attention(qp, kp, vp, num_heads, *, tq=None, tkv=None):
    """qp/kp/vp: (B, S, D) projected tensors (merged-head layout). Returns (B,S,D)."""
    B, S, D = qp.shape
    assert D % num_heads == 0
    d_k = D // num_heads
    dsize = jnp.dtype(qp.dtype).itemsize

    if tq is None or tkv is None:
        atq, atkv = _attention_tiles(S, d_k, dsize)
        tq = atq if tq is None else tq
        tkv = atkv if tkv is None else tkv
    assert S % tq == 0 and S % tkv == 0, (S, tq, tkv)

    cost = pl.CostEstimate(
        flops=4 * B * S * S * D,                        # QK^T + PV
        transcendentals=B * num_heads * S * S,          # exp
        # Q + O once, K/V re-streamed once per q tile.
        bytes_accessed=int(B * S * D * (2 + 2 * (S // tq)) * dsize),
    )
    scratch = [
        pltpu.VMEM((tq, 1), jnp.float32),               # running max m
        pltpu.VMEM((tq, 1), jnp.float32),               # running sum l
        pltpu.VMEM((tq, d_k), jnp.float32),             # f32 accumulator
    ]

    if d_k % 128 == 0:
        # Heads on the grid, slicing the D (lane) axis directly: blocks stay
        # (8,128)-aligned and stores are lane-dense. No wrapper transposes.
        kernel = functools.partial(_flash_kernel, kv_axis=3)
        grid = (B, num_heads, S // tq, S // tkv)
        in_specs = [
            pl.BlockSpec((1, tq, d_k), lambda b, h, qi, ki: (b, qi, h)),
            pl.BlockSpec((1, tkv, d_k), lambda b, h, qi, ki: (b, ki, h)),
            pl.BlockSpec((1, tkv, d_k), lambda b, h, qi, ki: (b, ki, h)),
        ]
        out_specs = pl.BlockSpec((1, tq, d_k), lambda b, h, qi, ki: (b, qi, h))
        return pl.pallas_call(
            kernel,
            out_shape=jax.ShapeDtypeStruct((B, S, D), qp.dtype),
            grid_spec=pltpu.PrefetchScalarGridSpec(
                num_scalar_prefetch=0, grid=grid,
                in_specs=in_specs, out_specs=out_specs,
                scratch_shapes=scratch),
            compiler_params=pltpu.CompilerParams(
                dimension_semantics=("parallel", "parallel", "parallel",
                                     "arbitrary"),
                vmem_limit_bytes=_VMEM_LIMIT),
            cost_estimate=cost,
        )(qp, kp, vp)

    # d_k not lane-aligned: one HBM transform to head-major (B*H, S, d_k) so
    # every kernel block is full-width (no sub-128 lane slicing inside).
    def split(x):
        return (x.reshape(B, S, num_heads, d_k)
                 .transpose(0, 2, 1, 3)
                 .reshape(B * num_heads, S, d_k))

    qh, kh, vh = split(qp), split(kp), split(vp)
    kernel = functools.partial(_flash_kernel, kv_axis=2)
    grid = (B * num_heads, S // tq, S // tkv)
    in_specs = [
        pl.BlockSpec((1, tq, d_k), lambda g, qi, ki: (g, qi, 0)),
        pl.BlockSpec((1, tkv, d_k), lambda g, qi, ki: (g, ki, 0)),
        pl.BlockSpec((1, tkv, d_k), lambda g, qi, ki: (g, ki, 0)),
    ]
    out_specs = pl.BlockSpec((1, tq, d_k), lambda g, qi, ki: (g, qi, 0))
    ctx = pl.pallas_call(
        kernel,
        out_shape=jax.ShapeDtypeStruct((B * num_heads, S, d_k), qp.dtype),
        grid_spec=pltpu.PrefetchScalarGridSpec(
            num_scalar_prefetch=0, grid=grid,
            in_specs=in_specs, out_specs=out_specs,
            scratch_shapes=scratch),
        compiler_params=pltpu.CompilerParams(
            dimension_semantics=("parallel", "parallel", "arbitrary"),
            vmem_limit_bytes=_VMEM_LIMIT),
        cost_estimate=cost,
    )(qh, kh, vh)
    return (ctx.reshape(B, num_heads, S, d_k)
               .transpose(0, 2, 1, 3)
               .reshape(B, S, D))


# ---------------------------------------------------------------------------
# Module wrapper (forward semantics identical to the PyTorch module)
# ---------------------------------------------------------------------------
class ScaledDotProductAttentionPallas:
    def __init__(self, d_model, num_heads, key):
        assert d_model % num_heads == 0
        self.d_model = d_model
        self.num_heads = num_heads
        self.d_k = d_model // num_heads
        keys = jax.random.split(key, 8)
        bound = 1.0 / math.sqrt(d_model)

        def init_w(k):
            # stored as (D_in, D_out), i.e. PyTorch weight.T
            return jax.random.uniform(k, (d_model, d_model), jnp.float32,
                                      -bound, bound)

        def init_b(k):
            return jax.random.uniform(k, (d_model,), jnp.float32, -bound, bound)

        self.wq, self.bq = init_w(keys[0]), init_b(keys[1])
        self.wk, self.bk = init_w(keys[2]), init_b(keys[3])
        self.wv, self.bv = init_w(keys[4]), init_b(keys[5])
        self.wo, self.bo = init_w(keys[6]), init_b(keys[7])

        # Fold the 1/sqrt(d_k) softmax scale into the Q projection once
        # (exact; removes the per-kv-step rescale of the resident Q block).
        scale = 1.0 / math.sqrt(self.d_k)
        self.wq_scaled = self.wq * scale
        self.bq_scaled = self.bq * scale

    def __call__(self, q, k, v):
        B, S, D = q.shape

        # Q/K/V projections (tiled bf16-operand GEMMs, f32 accumulate).
        # Projected activations are kept in bf16 to halve attention streaming.
        qp = linear(q.reshape(B * S, D), self.wq_scaled, self.bq_scaled,
                    out_dtype=jnp.bfloat16).reshape(B, S, D)
        kp = linear(k.reshape(B * S, D), self.wk, self.bk,
                    out_dtype=jnp.bfloat16).reshape(B, S, D)
        vp = linear(v.reshape(B * S, D), self.wv, self.bv,
                    out_dtype=jnp.bfloat16).reshape(B, S, D)

        # Flash-style multi-head attention, heads on the grid.
        ctx = mha_attention(qp, kp, vp, self.num_heads)       # (B, S, D) bf16

        # Output projection back to the input dtype.
        out = linear(ctx.reshape(B * S, D), self.wo, self.bo,
                     out_dtype=q.dtype)
        return out.reshape(B, S, D)


# ---------------------------------------------------------------------------
# Pure-JAX reference for validation (full f32, original PyTorch semantics)
# ---------------------------------------------------------------------------
def reference_forward(mod, q, k, v):
    B, S, D = q.shape
    H, d_k = mod.num_heads, mod.d_k

    def lin(x, w, b):
        return x @ w + b

    def split_heads(x):
        return x.reshape(B, S, H, d_k).transpose(0, 2, 1, 3)

    qh = split_heads(lin(q, mod.wq, mod.bq))
    kh = split_heads(lin(k, mod.wk, mod.bk))
    vh = split_heads(lin(v, mod.wv, mod.bv))
    scores = jnp.einsum("bhqd,bhkd->bhqk", qh, kh) / math.sqrt(d_k)
    attn = jax.nn.softmax(scores, axis=-1)
    ctx = jnp.einsum("bhqk,bhkd->bhqd", attn, vh)
    ctx = ctx.transpose(0, 2, 1, 3).reshape(B, S, D)
    return lin(ctx, mod.wo, mod.bo)


if __name__ == "__main__":
    def run_case(B, S, d_model, num_heads):
        key = jax.random.PRNGKey(0)
        k_param, kq, kk, kv = jax.random.split(key, 4)
        module = ScaledDotProductAttentionPallas(d_model, num_heads, k_param)

        q = jax.random.normal(kq, (B, S, d_model), jnp.float32)
        k = jax.random.normal(kk, (B, S, d_model), jnp.float32)
        v = jax.random.normal(kv, (B, S, d_model), jnp.float32)

        out = jax.block_until_ready(module(q, k, v))
        ref = reference_forward(module, q, k, v)

        assert out.shape == (B, S, d_model), out.shape
        # bf16 MXU operands + approx reciprocal are deliberate perf tradeoffs,
        # hence the relaxed tolerance vs. the full-f32 reference.
        err = float(jnp.max(jnp.abs(out - ref)))
        assert jnp.allclose(out, ref, atol=2e-2, rtol=2e-2), (
            B, S, d_model, num_heads, err)

    # Path 1: d_k = 8 (< 128) -> head-major (B*H, S, d_k) layout.
    run_case(B=2, S=8, d_model=32, num_heads=4)
    # Path 2: d_k = 128 -> heads on the grid over the merged (B, S, D) layout.
    run_case(B=1, S=8, d_model=256, num_heads=2)

    print("KERNEL_OK")
</pallas_src>

<mosaic_0001>
module attributes {stable_mosaic.version = 11 : i64} {
  func.func @_linear_kernel(%arg0: i32, %arg1: i32, %arg2: i32, %arg3: memref<16x32xbf16, #tpu.memory_space<vmem>>, %arg4: memref<32x32xbf16, #tpu.memory_space<vmem>>, %arg5: memref<1x32xf32, #tpu.memory_space<vmem>>, %arg6: memref<16x32xbf16, #tpu.memory_space<vmem>>, %arg7: memref<16x32xf32, #tpu.memory_space<vmem>>) attributes {dimension_semantics = [#tpu.dimension_semantics<parallel>, #tpu.dimension_semantics<parallel>, #tpu.dimension_semantics<arbitrary>], iteration_bounds = array<i64: 1, 1, 1>, scalar_prefetch = 0 : i64, scratch_operands = 1 : i64, tpu.core_type = #tpu.core_type<tc>, window_params = [{transform_indices = @transform_0, window_bounds = array<i64: 16, 32>}, {transform_indices = @transform_1, window_bounds = array<i64: 32, 32>}, {transform_indices = @transform_2, window_bounds = array<i64: 1, 32>}, {transform_indices = @transform_3, window_bounds = array<i64: 16, 32>}]} {
    %c0_i32 = arith.constant 0 : i32
    %0 = arith.cmpi eq, %arg2, %c0_i32 : i32
    %1 = arith.extui %0 : i1 to i32
    %c0_i32_0 = arith.constant 0 : i32
    %2 = arith.cmpi ne, %1, %c0_i32_0 : i32
    scf.if %2 {
      %cst_10 = arith.constant 0.000000e+00 : f32
      %12 = vector.broadcast %cst_10 : f32 to vector<16x32xf32>
      %c0_11 = arith.constant 0 : index
      %c0_12 = arith.constant 0 : index
      %13 = vector.load %arg7[%c0_11, %c0_12] : memref<16x32xf32, #tpu.memory_space<vmem>>, vector<16x32xf32>
      tpu.vector_store %arg7[%c0_11, %c0_12], %12 {strides = array<i32>} : memref<16x32xf32, #tpu.memory_space<vmem>>, vector<16x32xf32>,
    } else {
    }
    %c0 = arith.constant 0 : index
    %c0_1 = arith.constant 0 : index
    %3 = vector.load %arg7[%c0, %c0_1] : memref<16x32xf32, #tpu.memory_space<vmem>>, vector<16x32xf32>
    %c0_2 = arith.constant 0 : index
    %c0_3 = arith.constant 0 : index
    %4 = vector.load %arg3[%c0_2, %c0_3] : memref<16x32xbf16, #tpu.memory_space<vmem>>, vector<16x32xbf16>
    %c0_4 = arith.constant 0 : index
    %c0_5 = arith.constant 0 : index
    %5 = vector.load %arg4[%c0_4, %c0_5] : memref<32x32xbf16, #tpu.memory_space<vmem>>, vector<32x32xbf16>
    %cst = arith.constant dense<0.000000e+00> : vector<16x32xf32>
    %6 = tpu.matmul %4, %5, %cst {dimension_numbers = #tpu.dot_dimension_numbers<[1], [0], [0], [1], [0, 0, 1, 1], [], []>} : vector<16x32xbf16>, vector<32x32xbf16>, vector<16x32xf32> -> vector<16x32xf32>
    %7 = arith.addf %3, %6 : vector<16x32xf32>
    %c0_6 = arith.constant 0 : index
    %c0_7 = arith.constant 0 : index
    %8 = vector.load %arg7[%c0_6, %c0_7] : memref<16x32xf32, #tpu.memory_space<vmem>>, vector<16x32xf32>
    tpu.vector_store %arg7[%c0_6, %c0_7], %7 {strides = array<i32>} : memref<16x32xf32, #tpu.memory_space<vmem>>, vector<16x32xf32>,
    %c0_i32_8 = arith.constant 0 : i32
    %9 = arith.cmpi eq, %arg2, %c0_i32_8 : i32
    %10 = arith.extui %9 : i1 to i32
    %c0_i32_9 = arith.constant 0 : i32
    %11 = arith.cmpi ne, %10, %c0_i32_9 : i32
    scf.if %11 {
      %c0_10 = arith.constant 0 : index
      %c0_11 = arith.constant 0 : index
      %12 = vector.load %arg7[%c0_10, %c0_11] : memref<16x32xf32, #tpu.memory_space<vmem>>, vector<16x32xf32>
      %c0_12 = arith.constant 0 : index
      %c0_13 = arith.constant 0 : index
      %13 = vector.load %arg5[%c0_12, %c0_13] : memref<1x32xf32, #tpu.memory_space<vmem>>, vector<1x32xf32>
      %14 = vector.broadcast %13 : vector<1x32xf32> to vector<16x32xf32>
      %15 = arith.addf %12, %14 : vector<16x32xf32>
      %16 = arith.truncf %15 : vector<16x32xf32> to vector<16x32xbf16>
      %c0_14 = arith.constant 0 : index
      %c0_15 = arith.constant 0 : index
      %17 = vector.load %arg6[%c0_14, %c0_15] : memref<16x32xbf16, #tpu.memory_space<vmem>>, vector<16x32xbf16>
      tpu.vector_store %arg6[%c0_14, %c0_15], %16 {strides = array<i32>} : memref<16x32xbf16, #tpu.memory_space<vmem>>, vector<16x32xbf16>,
    } else {
    }
    return
  }
  func.func @transform_0(%arg0: i32, %arg1: i32, %arg2: i32) -> (i32, i32) {
    %c0_i32 = arith.constant 0 : i32
    return %arg0, %arg2 : i32, i32
  }
  func.func @transform_1(%arg0: i32, %arg1: i32, %arg2: i32) -> (i32, i32) {
    %c0_i32 = arith.constant 0 : i32
    return %arg2, %arg1 : i32, i32
  }
  func.func @transform_2(%arg0: i32, %arg1: i32, %arg2: i32) -> (i32, i32) {
    %c0_i32 = arith.constant 0 : i32
    %c0_i32_0 = arith.constant 0 : i32
    return %c0_i32, %arg1 : i32, i32
  }
  func.func @transform_3(%arg0: i32, %arg1: i32, %arg2: i32) -> (i32, i32) {
    %c0_i32 = arith.constant 0 : i32
    return %arg0, %arg1 : i32, i32
  }
}

</mosaic_0001>

<bundles_post_ra>
// kernel: tpu_custom_call.1
= control target key start
LH: loop header
LB: loop body
LE: loop exit
PB: predicated region body
PF: predicated region fallthrough
CT: control target
= control target key end

     0   :  { %8 = vsyncpa [#allocation4], 0  ;;  %s317_s0 = inlined_call_operand.hbm [shape: bf16[16,32], index: 0, kind: input, shape index: {}]   ;;  %s318_s1 = inlined_call_operand.hbm [shape: bf16[32,32], index: 1, kind: input, shape index: {}]   ;;  %s319_s2 = inlined_call_operand.vmem [shape: f32[1,32], index: 2, kind: input, shape index: {}]   ;;  %s320_s3 = inlined_call_operand.hbm [shape: bf16[16,32], index: 3, kind: output, shape index: {}]  }
   0x1   :  { %9 = vsyncpa [#allocation7], 0 }
   0x2   :  { %10 = vsyncpa [#allocation5], 0  ;;  %s264_s12 = smov [#allocation3]  }
   0x3   :  { %s16_s13 = sshll.u32 %s264_s12, 4  ;;  %s17_s13 = int_to_ptr.vmem [resolvable:$true] %s16_s13 }
   0x4   :  { %s206_s14 = scalar_lea.vmem %s17_s13, 128  ;;  %p211_p1 = scmp.lt.s32.totalorder %s17_s13, %s17_s13 }
   0x5   :  { %p207_p0 = scmp.ne.s32.totalorder %s17_s13, %s206_s14  ;;  %p212_p2 = scmp.lt.s32.totalorder %s206_s14, %s206_s14 }
   0x7   :  { %p213_p3 = por %p212_p2, %p211_p1 }
   0x9   :  { %p214_p4 = pnand %p213_p3, %p207_p0 }
   0xb   :  { %217 = shalt.err (!%p214_p4)
}
   0xc   :  { %s265_s15 = smov 64   ;;  %s266_s16 = smov 4  }
   0xd   :  { %22 = dma.hbm_to_vmem [thread:$0]  %s317_s0, 128, %s17_s13, [#allocation4], %s265_s15, %s265_s15, %s266_s16  }
   0xe   :  { %s267_s19 = smov [#allocation6]  }
   0xf   :  { %s28_s20 = sshll.u32 %s267_s19, 4  ;;  %s29_s20 = int_to_ptr.vmem [resolvable:$true] %s28_s20 }
  0x10   :  { %s226_s21 = scalar_lea.vmem %s29_s20, 256  ;;  %p231_p6 = scmp.lt.s32.totalorder %s29_s20, %s29_s20 }
  0x11   :  { %p227_p5 = scmp.ne.s32.totalorder %s29_s20, %s226_s21  ;;  %p232_p7 = scmp.lt.s32.totalorder %s226_s21, %s226_s21 }
  0x13   :  { %p233_p8 = por %p232_p7, %p231_p6 }
  0x15   :  { %p234_p9 = pnand %p233_p8, %p227_p5 }
  0x17   :  { %237 = shalt.err (!%p234_p9)
}
  0x18   :  { %34 = dma.hbm_to_vmem [thread:$0]  %s318_s1, 256, %s29_s20, [#allocation7], %s265_s15, %s265_s15, %s266_s16  }
  0x19   :  { %258 = dma.done.wait [#allocation4], 128  }
  0x1a   :  { %259 = vsyncadd [#allocation4], 4294967168 }
  0x1b   :  { %260 = dma.done.wait [#allocation7], 256  }
  0x1c   :  { %261 = vsyncadd [#allocation7], 4294967040  ;;  %vm48_vm0 = vcmask 261120   ;;  %v268_v0 = vmov 0.0   ;;  %vm269_vm1 = vmmov 0   ;;  %v195_v1 = vld [vmem:[#allocation6 + $0x8] sm:$0xff]  }
  0x1d   :  { %180 = vmatprep.subr.bf16.mxu0 %v268_v0  ;;  %184 = vmatprep.mubr.msk.bf16.mxu0 %vm269_vm1, %v268_v0  ;;  %49 = vst.msk [vmem:[#allocation2] sm:$0xff] %vm48_vm0, %v268_v0  ;;  %50 = vst.msk [vmem:[#allocation2 + $0x8] sm:$0xff] %vm48_vm0, %v268_v0  ;;  %v196_v2 = vld [vmem:[#allocation6] sm:$0xff]   ;;  %v197_v3 = vld [vmem:[#allocation3] sm:$0xff]   ;;  %vm147_vm2 = vcmask 257024   ;;  %s270_s24 = smov [#allocation8]  }
  0x1e   :  { %181 = vmatpush3.bf16.msra.mxu0 %v195_v1  ;;  %v172_v12 = vld [vmem:[%s319_s2] ss:$0 sm:$0xff]  ;;  %s155_s25 = sshll.u32 %s270_s24, 4  ;;  %s156_s25 = int_to_ptr.vmem [resolvable:$true] %s155_s25 }
  0x1f   :  { %182 = vmatprep.subr.bf16.mxu0 %v268_v0  ;;  %s238_s26 = scalar_lea.vmem %s156_s25, 128  ;;  %p243_p11 = scmp.lt.s32.totalorder %s156_s25, %s156_s25 }
  0x20   :  { %p239_p10 = scmp.ne.s32.totalorder %s156_s25, %s238_s26  ;;  %p244_p12 = scmp.lt.s32.totalorder %s238_s26, %s238_s26 }
  0x22   :  { %183 = vmatpush3.bf16.msra.mxu0 %v196_v2  ;;  %p245_p13 = por %p244_p12, %p243_p11 }
  0x24   :  { %v51_v4 = vld [vmem:[#allocation2] sm:$0xff]  ;;  %v52_v8 = vld [vmem:[#allocation2 + $0x8] sm:$0xff]  ;;  %p246_p0 = pnand %p245_p13, %p239_p10 }
  0x25   :  { %185 = vmatmul.mubr.msk.bf16.vlgmr.msra.gmra.mxu0 %vm48_vm0, %v197_v3 }
  0xe5   :  { %v114_v5 = vpop.f32.mrf.mxu0 }
  0xe6   :  { %v121_v6 = vadd.f32 %v114_v5, %v51_v4 }
  0xe7   :  { %v186_v7 = vpop.f32.mrf.mxu0 }
  0xe8   :  { %123 = vst.msk [vmem:[#allocation2] sm:$0xff] %vm48_vm0, %v121_v6 }
  0xe9   :  { %v117_v9 = vpop.f32.mrf.mxu0 }
  0xea   :  { %v122_v10 = vadd.f32 %v117_v9, %v52_v8 }
  0xeb   :  { %v187_v11 = vpop.f32.mrf.mxu0 }
  0xec   :  { %124 = vst.msk [vmem:[#allocation2 + $0x8] sm:$0xff] %vm48_vm0, %v122_v10 }
  0xef   :  { %v128_v13 = vld [vmem:[#allocation2] sm:$0xff] }
  0xf0   :  { %v137_v14 = vadd.f32 %v172_v12, %v128_v13 }
  0xf2   :  { %v175_v15 = vpack.c.bf16 %v137_v14, %v137_v14 }
  0xf3   :  { %v129_v16 = vld [vmem:[#allocation2 + $0x8] sm:$0xff] }
  0xf4   :  { %v138_v17 = vadd.f32 %v172_v12, %v129_v16  ;;  %148 = vst.msk [vmem:[#allocation8] sm:$0xf] %vm147_vm2, %v175_v15 }
  0xf6   :  { %v176_v18 = vpack.c.bf16 %v138_v17, %v138_v17 }
  0xf8   :  { %149 = vst.msk [vmem:[#allocation8 + $0x4] sm:$0xf] %vm147_vm2, %v176_v18 }
  0xf9   :  { %249 = shalt.err (!%p246_p0)
}
  0xfa   :  { %161 = dma.vmem_to_hbm [thread:$0]  %s156_s25, 128, %s320_s3, [#allocation5], %s265_s15, %s265_s15, %s266_s16  }
  0xfb   :  { %262 = dma.done.wait [#allocation5], 128  }
  0xfc   :  { %263 = vsyncadd [#allocation5], 4294967168 }
  0xfd   :  { %165 = vsyncpa [#allocation4], 1 }
  0xfe   :  { %166 = vsyncpa [#allocation7], 1 }
  0xff   :  { %167 = vsyncpa [#allocation5], 1 }

</bundles_post_ra>
